<compile_context>
chip_gen: v6e
topology: v6e:2x2x1
jax: 0.10.0
libtpu: 0.0.40
codegen_flags: <defaults>
</compile_context>

<pallas_src>
import functools

import jax
import jax.numpy as jnp
from jax import lax
from jax.experimental import pallas as pl
from jax.experimental.pallas import tpu as pltpu

LANES = 128


def _bce_dice_kernel(x_ref, t_ref, inter_out, denom_out, ce_out, *, groups):
    t = pl.program_id(1)

    # Output blocks are resident across the (arbitrary) pixel-tile axis and
    # double as accumulators: zero them on the first tile of each image.
    @pl.when(t == 0)
    def _():
        inter_out[...] = jnp.zeros_like(inter_out)
        denom_out[...] = jnp.zeros_like(denom_out)
        ce_out[...] = jnp.zeros_like(ce_out)

    x = x_ref[0].astype(jnp.float32)          # (C, TS, 128) logits
    tgt = t_ref[0].astype(jnp.int32)          # (TS, 128) class indices

    # Channel softmax: C-way elementwise max/add over dense vregs (VPU only,
    # no sublane/XLU reduce).
    m = jnp.max(x, axis=0, keepdims=True)     # (1, TS, 128)
    xm = x - m
    e = jnp.exp(xm)
    s = jnp.sum(e, axis=0, keepdims=True)     # (1, TS, 128)
    r = pl.reciprocal(s, approx=True)         # EUP vrcp (free slot)
    r = r * (2.0 - s * r)                     # one Newton step -> ~f32 exact
    p = e * r                                 # softmax probabilities

    # One-hot target built on the fly (no HBM traffic for the one-hot tensor).
    classes = lax.broadcasted_iota(jnp.int32, x.shape, 0)
    y = (classes == tgt[None]).astype(jnp.float32)           # (C, TS, 128)

    # Per-pixel NLL: log(sum exp) - (x_true - m); no materialized log-softmax.
    nll = jnp.log(s)[0] - jnp.sum(y * xm, axis=0)             # (TS, 128)

    def gsum(a):
        # (..., groups*8, 128) -> (..., 8, 128): pairwise tree of whole-vreg
        # VPU adds over statically-sliced sublane groups (no XLU, no relayout).
        parts = [a[..., g * 8:(g + 1) * 8, :] for g in range(groups)]
        while len(parts) > 1:
            nxt = [parts[i] + parts[i + 1] for i in range(0, len(parts) - 1, 2)]
            if len(parts) % 2:
                nxt.append(parts[-1])
            parts = nxt
        return parts[0]

    # Single small load+add+store per accumulator per step (ts/8x less VMEM
    # traffic than accumulating the full tile).
    inter_out[0] += gsum(p * y)               # (C, 8, 128)
    denom_out[0] += gsum(p * p + y)           # y*y == y for a 0/1 one-hot
    ce_out[0] += gsum(nll)                    # (8, 128)


def _vmem_capacity_bytes():
    try:
        cap = int(getattr(pltpu.get_tpu_info(), "vmem_capacity_bytes", 0) or 0)
        if cap > 0:
            return cap
    except Exception:
        pass
    return 64 << 20   # conservative (v7x per-core size); v5e/v6e have 128 MiB


def bce_dice_loss(pred, target, *, alpha=1.0, beta=0.5, block_rows=None):
    """alpha * CrossEntropy(pred, target) + beta * DiceLoss(softmax(pred), onehot(target)).

    pred: (N, C, H, W) float logits (f32 or bf16; bf16 halves HBM traffic).
    target: (N, H, W) integer class indices.
    """
    N, C, H, W = pred.shape
    hw = H * W
    xbytes = jnp.dtype(pred.dtype).itemsize

    vmem_cap = _vmem_capacity_bytes()

    # ---- pixel tiling: `ts` sublane rows of 128 lanes per grid step ----
    if block_rows is None:
        # Budget double-buffered input blocks + ~8 live f32 temporaries under
        # ~37.5% of physical VMEM (generation aware), capped at 1024 rows.
        budget = (vmem_cap * 3) // 8
        est_row = LANES * (2 * (C * xbytes + (1 if C <= 127 else 4))
                           + 8 * C * 4 + 16)
        block_rows = min(1024, max(32, budget // est_row))
    block_rows = max(32, (int(block_rows) // 32) * 32)

    l_total = pl.cdiv(hw, LANES)
    if l_total <= block_rows:
        # single tile per image: round only as much as the dtype packing needs
        granule = 8 if xbytes >= 4 else (16 if xbytes == 2 else 32)
        ts = ((l_total + granule - 1) // granule) * granule
        num_t = 1
    else:
        ts = block_rows                          # multiple of 32
        num_t = pl.cdiv(l_total, ts)
    l_pad = num_t * ts
    hw_pad = l_pad * LANES
    n_pad = hw_pad - hw                          # padded pixels per image

    use_i8 = (C <= 127) and (ts % 32 == 0)
    tdtype = jnp.int8 if use_i8 else jnp.int32

    # ---- layout plumbing only: contiguous reshapes, no transpose, no logit cast ----
    xr = pred.reshape(N, C, hw)
    tr = target.reshape(N, hw).astype(tdtype)
    if n_pad:
        xr = jnp.pad(xr, ((0, 0), (0, 0), (0, n_pad)))
        tr = jnp.pad(tr, ((0, 0), (0, n_pad)))
    x4 = xr.reshape(N, C, l_pad, LANES)
    t3 = tr.reshape(N, l_pad, LANES)

    groups = ts // 8
    kernel = functools.partial(_bce_dice_kernel, groups=groups)

    # scoped VMEM: 2x input blocks + in-kernel f32 temporaries + slack
    est_row = LANES * (2 * (C * xbytes + jnp.dtype(tdtype).itemsize)
                       + 8 * C * 4 + 16)
    vmem_limit = int(min(vmem_cap, max(ts * est_row + (4 << 20), 32 << 20)))

    out_shapes = (
        jax.ShapeDtypeStruct((N, C, 8, LANES), jnp.float32),   # sum p*y
        jax.ShapeDtypeStruct((N, C, 8, LANES), jnp.float32),   # sum p*p + y
        jax.ShapeDtypeStruct((N, 8, LANES), jnp.float32),      # sum nll
    )

    inter, denom, ce = pl.pallas_call(
        kernel,
        out_shape=out_shapes,
        grid_spec=pltpu.PrefetchScalarGridSpec(
            num_scalar_prefetch=0,
            grid=(N, num_t),
            in_specs=[
                pl.BlockSpec((1, C, ts, LANES), lambda n, t: (n, 0, t, 0)),
                pl.BlockSpec((1, ts, LANES), lambda n, t: (n, t, 0)),
            ],
            out_specs=[
                pl.BlockSpec((1, C, 8, LANES), lambda n, t: (n, 0, 0, 0)),
                pl.BlockSpec((1, C, 8, LANES), lambda n, t: (n, 0, 0, 0)),
                pl.BlockSpec((1, 8, LANES), lambda n, t: (n, 0, 0)),
            ],
        ),
        compiler_params=pltpu.CompilerParams(
            dimension_semantics=("parallel", "arbitrary"),
            vmem_limit_bytes=vmem_limit),
    )(x4, t3)

    # ---- tiny final combine (a few KB of floats) in plain JAX ----
    inter_c = jnp.sum(inter, axis=(0, 2, 3))     # (C,)
    denom_c = jnp.sum(denom, axis=(0, 2, 3))     # (C,)
    ce_sum = jnp.sum(ce)

    if n_pad:
        # Padded pixels have all-zero logits (softmax p = 1/C for every class)
        # and class-0 targets (nll = log C): subtract their analytically-known
        # contributions instead of masking them on the kernel's hot path.
        pad_cnt = float(n_pad * N)
        inter_c = inter_c.at[0].add(-pad_cnt / C)
        denom_c = denom_c - pad_cnt / (C * C)
        denom_c = denom_c.at[0].add(-pad_cnt)
        ce_sum = ce_sum - pad_cnt * jnp.log(jnp.float32(C))

    smooth = 1e-5
    dice = (2.0 * inter_c + smooth) / denom_c
    dice_loss = jnp.mean(1.0 - dice)
    ce_loss = ce_sum / (N * hw)
    return alpha * ce_loss + beta * dice_loss


def _reference(pred, target, alpha=1.0, beta=0.5):
    # pure-JAX reference of the PyTorch module (weight=None path)
    N, C, H, W = pred.shape
    logits = pred.astype(jnp.float32)
    logp = jax.nn.log_softmax(logits, axis=1)
    p = jnp.exp(logp)
    y = jax.nn.one_hot(target, C, axis=1, dtype=jnp.float32)   # (N, C, H, W)
    ce = -jnp.mean(jnp.sum(y * logp, axis=1))
    smooth = 1e-5
    inter = jnp.sum(p * y, axis=(0, 2, 3))
    psum = jnp.sum(p * p, axis=(0, 2, 3))
    ysum = jnp.sum(y * y, axis=(0, 2, 3))
    dice = (2.0 * inter + smooth) / (psum + ysum)
    dice_loss = jnp.mean(1.0 - dice)
    return alpha * ce + beta * dice_loss


if __name__ == "__main__":
    key = jax.random.PRNGKey(0)
    ks = jax.random.split(key, 8)

    def check(pred, target, msg, **kw):
        loss = jax.block_until_ready(bce_dice_loss(pred, target, **kw))
        ref = _reference(pred, target)
        assert jnp.allclose(loss, ref, rtol=1e-4, atol=1e-5), (msg, loss, ref)

    # 1) spec-sized case: N=2, C=4, 16x16 (single pixel tile)
    pred = jax.random.normal(ks[0], (2, 4, 16, 16), dtype=jnp.float32)
    target = jax.random.randint(ks[1], (2, 16, 16), 0, 4, dtype=jnp.int32)
    check(pred, target, "base")

    # 2) ragged spatial size (7x9): zero-pad + analytic tail correction
    pred2 = jax.random.normal(ks[2], (1, 3, 7, 9), dtype=jnp.float32)
    target2 = jax.random.randint(ks[3], (1, 7, 9), 0, 3, dtype=jnp.int32)
    check(pred2, target2, "ragged")

    # 3) larger spatial: auto tile (big single tile, int8 targets) and a
    #    forced multi-tile run exercising the resident-accumulator path
    pred3 = jax.random.normal(ks[4], (2, 4, 256, 256), dtype=jnp.float32)
    target3 = jax.random.randint(ks[5], (2, 256, 256), 0, 4, dtype=jnp.int32)
    check(pred3, target3, "auto-tile")
    check(pred3, target3, "multi-tile", block_rows=128)

    # 4) C > 127: int32 target fallback
    pred4 = jax.random.normal(ks[6], (1, 130, 32, 32), dtype=jnp.float32)
    target4 = jax.random.randint(ks[7], (1, 32, 32), 0, 130, dtype=jnp.int32)
    check(pred4, target4, "wide-C")

    # TODO(synk): optional class `weight` vector (PyTorch weight=None default
    # implemented); DiceLoss's host-side class_wise_dice .item() bookkeeping
    # is not reproduced.
    print("KERNEL_OK")
</pallas_src>

<mosaic_0001>
module attributes {stable_mosaic.version = 11 : i64} {
  func.func @_bce_dice_kernel(%arg0: i32, %arg1: i32, %arg2: memref<1x4x8x128xf32, #tpu.memory_space<vmem>>, %arg3: memref<1x8x128xi32, #tpu.memory_space<vmem>>, %arg4: memref<1x4x8x128xf32, #tpu.memory_space<vmem>>, %arg5: memref<1x4x8x128xf32, #tpu.memory_space<vmem>>, %arg6: memref<1x8x128xf32, #tpu.memory_space<vmem>>) attributes {dimension_semantics = [#tpu.dimension_semantics<parallel>, #tpu.dimension_semantics<arbitrary>], iteration_bounds = array<i64: 2, 1>, scalar_prefetch = 0 : i64, scratch_operands = 0 : i64, tpu.core_type = #tpu.core_type<tc>, window_params = [{transform_indices = @transform_0, window_bounds = array<i64: 1, 4, 8, 128>}, {transform_indices = @transform_1, window_bounds = array<i64: 1, 8, 128>}, {transform_indices = @transform_2, window_bounds = array<i64: 1, 4, 8, 128>}, {transform_indices = @transform_3, window_bounds = array<i64: 1, 4, 8, 128>}, {transform_indices = @transform_4, window_bounds = array<i64: 1, 8, 128>}]} {
    %c0_i32 = arith.constant 0 : i32
    %0 = arith.cmpi eq, %arg1, %c0_i32 : i32
    %1 = arith.extui %0 : i1 to i32
    %c0_i32_0 = arith.constant 0 : i32
    %2 = arith.cmpi ne, %1, %c0_i32_0 : i32
    scf.if %2 {
      %cst_32 = arith.constant 0.000000e+00 : f32
      %53 = vector.broadcast %cst_32 : f32 to vector<1x4x8x128xf32>
      %c0_33 = arith.constant 0 : index
      %c0_34 = arith.constant 0 : index
      %c0_35 = arith.constant 0 : index
      %c0_36 = arith.constant 0 : index
      %54 = vector.load %arg4[%c0_33, %c0_34, %c0_35, %c0_36] : memref<1x4x8x128xf32, #tpu.memory_space<vmem>>, vector<1x4x8x128xf32>
      tpu.vector_store %arg4[%c0_33, %c0_34, %c0_35, %c0_36], %53 {strides = array<i32>} : memref<1x4x8x128xf32, #tpu.memory_space<vmem>>, vector<1x4x8x128xf32>,
      %cst_37 = arith.constant 0.000000e+00 : f32
      %55 = vector.broadcast %cst_37 : f32 to vector<1x4x8x128xf32>
      %c0_38 = arith.constant 0 : index
      %c0_39 = arith.constant 0 : index
      %c0_40 = arith.constant 0 : index
      %c0_41 = arith.constant 0 : index
      %56 = vector.load %arg5[%c0_38, %c0_39, %c0_40, %c0_41] : memref<1x4x8x128xf32, #tpu.memory_space<vmem>>, vector<1x4x8x128xf32>
      tpu.vector_store %arg5[%c0_38, %c0_39, %c0_40, %c0_41], %55 {strides = array<i32>} : memref<1x4x8x128xf32, #tpu.memory_space<vmem>>, vector<1x4x8x128xf32>,
      %cst_42 = arith.constant 0.000000e+00 : f32
      %57 = vector.broadcast %cst_42 : f32 to vector<1x8x128xf32>
      %c0_43 = arith.constant 0 : index
      %c0_44 = arith.constant 0 : index
      %c0_45 = arith.constant 0 : index
      %58 = vector.load %arg6[%c0_43, %c0_44, %c0_45] : memref<1x8x128xf32, #tpu.memory_space<vmem>>, vector<1x8x128xf32>
      tpu.vector_store %arg6[%c0_43, %c0_44, %c0_45], %57 {strides = array<i32>} : memref<1x8x128xf32, #tpu.memory_space<vmem>>, vector<1x8x128xf32>,
    } else {
    }
    %c0 = arith.constant 0 : index
    %c0_1 = arith.constant 0 : index
    %c0_2 = arith.constant 0 : index
    %c0_3 = arith.constant 0 : index
    %3 = vector.load %arg2[%c0, %c0_1, %c0_2, %c0_3] : memref<1x4x8x128xf32, #tpu.memory_space<vmem>>, vector<1x4x8x128xf32>
    %4 = vector.shape_cast %3 : vector<1x4x8x128xf32> to vector<4x8x128xf32>
    %c0_4 = arith.constant 0 : index
    %c0_5 = arith.constant 0 : index
    %c0_6 = arith.constant 0 : index
    %5 = vector.load %arg3[%c0_4, %c0_5, %c0_6] : memref<1x8x128xi32, #tpu.memory_space<vmem>>, vector<1x8x128xi32>
    %6 = vector.shape_cast %5 : vector<1x8x128xi32> to vector<8x128xi32>
    %cst = arith.constant dense<0xFF800000> : vector<8x128xf32>
    %7 = vector.multi_reduction <maximumf>, %4, %cst [0] : vector<4x8x128xf32> to vector<8x128xf32>
    %8 = vector.shape_cast %7 : vector<8x128xf32> to vector<1x8x128xf32>
    %9 = vector.broadcast %8 : vector<1x8x128xf32> to vector<4x8x128xf32>
    %10 = arith.subf %4, %9 : vector<4x8x128xf32>
    %11 = math.exp %10 : vector<4x8x128xf32>
    %cst_7 = arith.constant dense<0.000000e+00> : vector<8x128xf32>
    %12 = vector.multi_reduction <add>, %11, %cst_7 [0] : vector<4x8x128xf32> to vector<8x128xf32>
    %13 = vector.shape_cast %12 : vector<8x128xf32> to vector<1x8x128xf32>
    %14 = tpu.reciprocal %13 {approx = true} : vector<1x8x128xf32> -> vector<1x8x128xf32>
    %15 = arith.mulf %13, %14 : vector<1x8x128xf32>
    %cst_8 = arith.constant 2.000000e+00 : f32
    %16 = vector.broadcast %cst_8 : f32 to vector<1x8x128xf32>
    %17 = arith.subf %16, %15 : vector<1x8x128xf32>
    %18 = arith.mulf %14, %17 : vector<1x8x128xf32>
    %19 = vector.broadcast %18 : vector<1x8x128xf32> to vector<4x8x128xf32>
    %20 = arith.mulf %11, %19 : vector<4x8x128xf32>
    %21 = tpu.iota {dimensions = array<i32: 0>} : vector<4x8x128xi32>
    %22 = vector.shape_cast %6 : vector<8x128xi32> to vector<1x8x128xi32>
    %23 = vector.broadcast %22 : vector<1x8x128xi32> to vector<4x8x128xi32>
    %24 = arith.cmpi eq, %21, %23 : vector<4x8x128xi32>
    %25 = arith.extui %24 : vector<4x8x128xi1> to vector<4x8x128xi32>
    %26 = arith.sitofp %25 : vector<4x8x128xi32> to vector<4x8x128xf32>
    %27 = math.log %13 : vector<1x8x128xf32>
    %28 = vector.shape_cast %27 : vector<1x8x128xf32> to vector<8x128xf32>
    %29 = arith.mulf %26, %10 : vector<4x8x128xf32>
    %cst_9 = arith.constant dense<0.000000e+00> : vector<8x128xf32>
    %30 = vector.multi_reduction <add>, %29, %cst_9 [0] : vector<4x8x128xf32> to vector<8x128xf32>
    %31 = arith.subf %28, %30 : vector<8x128xf32>
    %c0_10 = arith.constant 0 : index
    %c0_11 = arith.constant 0 : index
    %c0_12 = arith.constant 0 : index
    %c0_13 = arith.constant 0 : index
    %32 = vector.load %arg4[%c0_10, %c0_11, %c0_12, %c0_13] : memref<1x4x8x128xf32, #tpu.memory_space<vmem>>, vector<1x4x8x128xf32>
    %33 = vector.shape_cast %32 : vector<1x4x8x128xf32> to vector<4x8x128xf32>
    %34 = arith.mulf %20, %26 : vector<4x8x128xf32>
    %35 = arith.addf %33, %34 : vector<4x8x128xf32>
    %c0_14 = arith.constant 0 : index
    %c0_15 = arith.constant 0 : index
    %c0_16 = arith.constant 0 : index
    %c0_17 = arith.constant 0 : index
    %36 = vector.load %arg4[%c0_14, %c0_15, %c0_16, %c0_17] : memref<1x4x8x128xf32, #tpu.memory_space<vmem>>, vector<1x4x8x128xf32>
    %37 = vector.shape_cast %36 : vector<1x4x8x128xf32> to vector<4x8x128xf32>
    %38 = vector.shape_cast %35 : vector<4x8x128xf32> to vector<1x4x8x128xf32>
    tpu.vector_store %arg4[%c0_14, %c0_15, %c0_16, %c0_17], %38 {strides = array<i32>} : memref<1x4x8x128xf32, #tpu.memory_space<vmem>>, vector<1x4x8x128xf32>,
    %c0_18 = arith.constant 0 : index
    %c0_19 = arith.constant 0 : index
    %c0_20 = arith.constant 0 : index
    %c0_21 = arith.constant 0 : index
    %39 = vector.load %arg5[%c0_18, %c0_19, %c0_20, %c0_21] : memref<1x4x8x128xf32, #tpu.memory_space<vmem>>, vector<1x4x8x128xf32>
    %40 = vector.shape_cast %39 : vector<1x4x8x128xf32> to vector<4x8x128xf32>
    %41 = arith.mulf %20, %20 : vector<4x8x128xf32>
    %42 = arith.addf %41, %26 : vector<4x8x128xf32>
    %43 = arith.addf %40, %42 : vector<4x8x128xf32>
    %c0_22 = arith.constant 0 : index
    %c0_23 = arith.constant 0 : index
    %c0_24 = arith.constant 0 : index
    %c0_25 = arith.constant 0 : index
    %44 = vector.load %arg5[%c0_22, %c0_23, %c0_24, %c0_25] : memref<1x4x8x128xf32, #tpu.memory_space<vmem>>, vector<1x4x8x128xf32>
    %45 = vector.shape_cast %44 : vector<1x4x8x128xf32> to vector<4x8x128xf32>
    %46 = vector.shape_cast %43 : vector<4x8x128xf32> to vector<1x4x8x128xf32>
    tpu.vector_store %arg5[%c0_22, %c0_23, %c0_24, %c0_25], %46 {strides = array<i32>} : memref<1x4x8x128xf32, #tpu.memory_space<vmem>>, vector<1x4x8x128xf32>,
    %c0_26 = arith.constant 0 : index
    %c0_27 = arith.constant 0 : index
    %c0_28 = arith.constant 0 : index
    %47 = vector.load %arg6[%c0_26, %c0_27, %c0_28] : memref<1x8x128xf32, #tpu.memory_space<vmem>>, vector<1x8x128xf32>
    %48 = vector.shape_cast %47 : vector<1x8x128xf32> to vector<8x128xf32>
    %49 = arith.addf %48, %31 : vector<8x128xf32>
    %c0_29 = arith.constant 0 : index
    %c0_30 = arith.constant 0 : index
    %c0_31 = arith.constant 0 : index
    %50 = vector.load %arg6[%c0_29, %c0_30, %c0_31] : memref<1x8x128xf32, #tpu.memory_space<vmem>>, vector<1x8x128xf32>
    %51 = vector.shape_cast %50 : vector<1x8x128xf32> to vector<8x128xf32>
    %52 = vector.shape_cast %49 : vector<8x128xf32> to vector<1x8x128xf32>
    tpu.vector_store %arg6[%c0_29, %c0_30, %c0_31], %52 {strides = array<i32>} : memref<1x8x128xf32, #tpu.memory_space<vmem>>, vector<1x8x128xf32>,
    return
  }
  func.func @transform_0(%arg0: i32, %arg1: i32) -> (i32, i32, i32, i32) {
    %c0_i32 = arith.constant 0 : i32
    %c0_i32_0 = arith.constant 0 : i32
    %c0_i32_1 = arith.constant 0 : i32
    return %arg0, %c0_i32, %arg1, %c0_i32_0 : i32, i32, i32, i32
  }
  func.func @transform_1(%arg0: i32, %arg1: i32) -> (i32, i32, i32) {
    %c0_i32 = arith.constant 0 : i32
    %c0_i32_0 = arith.constant 0 : i32
    return %arg0, %arg1, %c0_i32 : i32, i32, i32
  }
  func.func @transform_2(%arg0: i32, %arg1: i32) -> (i32, i32, i32, i32) {
    %c0_i32 = arith.constant 0 : i32
    %c0_i32_0 = arith.constant 0 : i32
    %c0_i32_1 = arith.constant 0 : i32
    %c0_i32_2 = arith.constant 0 : i32
    return %arg0, %c0_i32, %c0_i32_0, %c0_i32_1 : i32, i32, i32, i32
  }
  func.func @transform_3(%arg0: i32, %arg1: i32) -> (i32, i32, i32, i32) {
    %c0_i32 = arith.constant 0 : i32
    %c0_i32_0 = arith.constant 0 : i32
    %c0_i32_1 = arith.constant 0 : i32
    %c0_i32_2 = arith.constant 0 : i32
    return %arg0, %c0_i32, %c0_i32_0, %c0_i32_1 : i32, i32, i32, i32
  }
  func.func @transform_4(%arg0: i32, %arg1: i32) -> (i32, i32, i32) {
    %c0_i32 = arith.constant 0 : i32
    %c0_i32_0 = arith.constant 0 : i32
    %c0_i32_1 = arith.constant 0 : i32
    return %arg0, %c0_i32, %c0_i32_0 : i32, i32, i32
  }
}

</mosaic_0001>

<bundles_post_ra>
// kernel: tpu_custom_call.1
= control target key start
LH: loop header
LB: loop body
LE: loop exit
PB: predicated region body
PF: predicated region fallthrough
CT: control target
= control target key end

     0   :  { %s1239_s0 = inlined_call_operand.hbm [shape: f32[2,4,8,128], index: 0, kind: input, shape index: {}]   ;;  %s1240_s1 = inlined_call_operand.hbm [shape: s32[2,8,128], index: 1, kind: input, shape index: {}]   ;;  %s1241_s2 = inlined_call_operand.hbm [shape: f32[2,4,8,128], index: 2, kind: output, shape index: {0}]   ;;  %s1242_s3 = inlined_call_operand.hbm [shape: f32[2,4,8,128], index: 3, kind: output, shape index: {1}]   ;;  %s1243_s4 = inlined_call_operand.hbm [shape: f32[2,8,128], index: 4, kind: output, shape index: {2}]  }
   0x1   :  { %1246 = sst [smem:[#allocation17_spill]] %s1239_s0 }
   0x2   :  { %10 = vsyncpa [#allocation3], 0 }
   0x3   :  { %12 = vsyncpa [#allocation3 + $0x1], 0 }
   0x4   :  { %13 = vsyncpa [#allocation6], 0 }
   0x5   :  { %15 = vsyncpa [#allocation6 + $0x1], 0 }
   0x6   :  { %16 = vsyncpa [#allocation4], 0 }
   0x7   :  { %18 = vsyncpa [#allocation4 + $0x1], 0 }
   0x8   :  { %19 = vsyncpa [#allocation9], 0 }
   0x9   :  { %21 = vsyncpa [#allocation9 + $0x1], 0  ;;  %s974_s15 = smov 0   ;;  %s976_s16 = smov 0  }
   0xa   :  { %s978_s17 = smov 0   ;;  %s980_s18 = smov 0  }
   0xb   :  { %s982_s19 = smov 0   ;;  %s984_s20 = smov 0  }
   0xc LB: > { %s1005_s21 = sadd.s32 4294967295, %s937_s20   ;;  %s1244_s22 = sadd.s32 4294967294, %s937_s20   ;;  %s937_s20 = sphi %s984_s20, %s27_s20   ;;  %s933_s19 = sphi %s982_s19, %s1263_s19   ;;  %s929_s18 = sphi %s980_s18, %s1262_s18   ;;  %s925_s17 = sphi %s978_s17, %s1261_s17   ;;  %s921_s16 = sphi %s976_s16, %s1260_s16   ;;  %s917_s15 = sphi %s974_s15, %s1259_s15  }
   0xd   : > { %s39_s23 = sadd.s32 1, %s933_s19  ;;  %s48_s24 = sadd.s32 1, %s925_s17 }
   0xe   : > { %p41_p0 = scmp.ge.s32.totalorder %s39_s23, 2  ;;  %p55_p1 = scmp.ne.s32.totalorder %s925_s17, %s921_s16 }
   0xf   : > { %p56_p2 = scmp.eq.s32.totalorder %s937_s20, 0  ;;  %p61_p3 = scmp.ne.s32.totalorder %s921_s16, %s917_s15 }
  0x10   : > { %s1265_s23 = smov (%p41_p0, %s39_s23), 0  ;;  %p62_p5 = scmp.eq.s32.totalorder %s1005_s21, 0 }
  0x11   : > { %1247 = sst [smem:[#allocation15_spill]] %s1265_s23  ;;  %p1017_p4 = por %p56_p2, %p55_p1 }
  0x12   : > { %s43_s26 = ssub.s32 %s933_s19, %s1265_s23  ;;  %p113_p6 = scmp.eq.s32.totalorder %s1005_s21, 1 }
  0x13   : > { %p46_p7 = scmp.eq.s32.totalorder %s43_s26, 0  ;;  %p1025_p8 = por %p62_p5, %p61_p3 }
  0x14   : > { %p1029_p9 = por %p113_p6, %p55_p1  ;;  %p119_p10 = scmp.eq.s32.totalorder %s1244_s22, 1 }
  0x15   : > { %s1036_s29 = scalar_select %p46_p7, %s925_s17, %s48_s24  }
  0x16   : > { %p1038_p11 = por %p119_p10, %p61_p3  ;;  %p618_p12 = scmp.ge.s32.totalorder %s937_s20, 2 }
  0x17   : > { %1251 = sst [smem:[#allocation16_spill]] %s1036_s29  ;;  %p674_p13 = scmp.lt.s32.totalorder %s937_s20, 2 }
  0x18   : > { %s1045_s5 = sand.u32 1, %s925_s17   ;;  %s644_s7 = sshll.u32 %s933_s19, 9 }
  0x19   : > { %s619_s6 = sshll.u32 %s1045_s5, 5  ;;  %s1253_s0 = sld [smem:[#allocation17_spill]] }
  0x1a   : > { %s195_s11 = scalar_lea.vmem [#allocation2], %s619_s6  ;;  %p1054_p0 = pnand %p674_p13, %p1017_p4 }
  0x1b   : > { %s203_s12 = sshll.u32 %s195_s11, 4  ;;  %p624_p1 = scmp.ge.s32.totalorder %s937_s20, 1  ;;  %s204_s12 = int_to_ptr.vmem [resolvable:$true] %s203_s12 }
  0x1c   : > { %s192_s14 = scalar_lea.sflag [#allocation3], %s1045_s5  ;;  %p743_p2 = pneg %p1054_p0 }
  0x1d   : > { %s754_s24 = scalar_lea.vmem %s204_s12, 512  ;;  %s939_s26 = smov [#allocation2]  }
  0x1e   : > { %p755_p3 = scmp.ne.s32.totalorder %s204_s12, %s754_s24  ;;  %s759_s6 = sshll.u32 %s939_s26, 4  ;;  %s760_s6 = int_to_ptr.vmem [resolvable:$false] %s759_s6 }
  0x1f   : > { %s202_s10 = scalar_lea.hbm %s1253_s0, %s644_s7  ;;  %s761_s25 = scalar_lea.vmem %s760_s6, 1024 }
  0x20   : > { %p757_p5 = pnand %p755_p3, %p743_p2  ;;  %p762_p4 = scmp.lt.s32.totalorder %s204_s12, %s760_s6 }
  0x21   : > { %p763_p7 = scmp.lt.s32.totalorder %s761_s25, %s754_s24 }
  0x22   : > { %p758_p6 = pneg %p757_p5 }
  0x23   : > { %p764_p10 = por %p763_p7, %p762_p4 }
  0x25   : > { %p765_p13 = pnand %p764_p10, %p758_p6 }
  0x27   : > { %768 = shalt.err (!%p765_p13)
}
  0x28   : > { %s940_s7 = smov 128   ;;  %s941_s8 = smov 8  }
  0x29   : > { %660 = dma.hbm_to_vmem [thread:$0]  (!%p1054_p0), %s202_s10, 512, %s204_s12, %s192_s14, %s940_s7, %s940_s7, %s941_s8  }
  0x2a   : > { %p230_p3 = scmp.lt.s32.totalorder %s937_s20, 3  ;;  %s622_s9 = sshll.u32 %s1045_s5, 3 }
  0x2b   : > { %s623_s11 = sshll.u32 %s933_s19, 7  ;;  %s217_s22 = scalar_lea.vmem [#allocation5], %s622_s9 }
  0x2c   : > { %p1072_p5 = pnand %p624_p1, %p230_p3  ;;  %s223_s25 = scalar_lea.hbm %s1240_s1, %s623_s11 }
  0x2d   : > { %s225_s0 = sshll.u32 %s217_s22, 4  ;;  %s214_s23 = scalar_lea.sflag [#allocation6], %s1045_s5  ;;  %s226_s0 = int_to_ptr.vmem [resolvable:$true] %s225_s0 }
  0x2e   : > { %s782_s29 = scalar_lea.vmem %s226_s0, 128  ;;  %s942_s10 = smov [#allocation5]  }
  0x2f   : > { %p783_p6 = scmp.ne.s32.totalorder %s226_s0, %s782_s29  ;;  %s787_s12 = sshll.u32 %s942_s10, 4  ;;  %s788_s12 = int_to_ptr.vmem [resolvable:$false] %s787_s12 }
  0x30   : > { %s789_s14 = scalar_lea.vmem %s788_s12, 256  ;;  %p790_p1 = scmp.lt.s32.totalorder %s226_s0, %s788_s12 }
  0x31   : > { %p785_p4 = pnand %p783_p6, %p743_p2  ;;  %p791_p10 = scmp.lt.s32.totalorder %s789_s14, %s782_s29 }
  0x33   : > { %p786_p7 = pneg %p785_p4  ;;  %p792_p13 = por %p791_p10, %p790_p1 }
  0x35   : > { %p793_p3 = pnand %p792_p13, %p786_p7 }
  0x37   : > { %796 = shalt.err (!%p793_p3)
}
  0x38   : > { %663 = dma.hbm_to_vmem [thread:$0]  (!%p1054_p0), %s223_s25, 128, %s226_s0, %s214_s23  }
  0x39   : > { %234 = sbr.rel (%p1072_p5) target bundleno = 182 (0xb6), region = 28  ;;  %s1088_s22 = sand.u32 (!%p1072_p5), 1, %s921_s16  }
  0x3a   : > { %s1091_s5 = sshll.u32 (!%p1072_p5), %s1088_s22, 5  ;;  %s237_s7 = scalar_lea.sflag (!%p1072_p5), [#allocation3], %s1088_s22 }
  0x3b   : > { %s240_s29 = scalar_lea.vmem (!%p1072_p5), [#allocation2], %s1091_s5 }
  0x3e   : > { %900 = dma.done.wait (%p1025_p8), %s237_s7, 512  }
  0x3f   : > { %902 = vsyncadd (%p1025_p8), %s237_s7, 4294966784  ;;  %s626_s0 = sshll.u32 %s1088_s22, 3  ;;  %s246_s23 = scalar_lea.sflag [#allocation6], %s1088_s22 }
  0x40   : > { %s249_s13 = scalar_lea.vmem [#allocation5], %s626_s0 }
  0x41   : > { %904 = dma.done.wait (%p1025_p8), %s246_s23, 128  }
  0x42   : > { %906 = vsyncadd (%p1025_p8), %s246_s23, 4294967168  ;;  %v302_v0 = vld [vmem:[%s240_s29] sm:$0xff]  ;;  %v303_v1 = vld [vmem:[%s240_s29 + $0x8] sm:$0xff]  ;;  %v943_v23 = vmov 0.0   ;;  %s399_s27 = sand.u32 1, %s1005_s21   ;;  %s1110_s8 = scalar_lea.vmem [#allocation10], %s626_s0 }
  0x43   : > { %v304_v2 = vld [vmem:[%s240_s29 + $0x10] sm:$0xff]  ;;  %v305_v3 = vld [vmem:[%s240_s29 + $0x18] sm:$0xff]  ;;  %v307_v4 = vmax.f32 %v302_v0, %v303_v1  ;;  %v306_v16 = vld [vmem:[%s249_s13] sm:$0xff]  ;;  %s450_s9 = sshll.u32 %s1110_s8, 4  ;;  %s645_s11 = sshll.u32 %s929_s18, 9  ;;  %s1132_s9 = int_to_ptr.vmem [resolvable:$true] %s450_s9 }
  0x44   : > { %v308_v5 = vmax.f32 %v304_v2, %v305_v3  ;;  %vm333_vm0 = vcmp.eq.s32.totalorder %v306_v16, 0  ;;  %vm334_vm1 = vcmp.eq.s32.totalorder %v306_v16, 1  ;;  %vm335_vm2 = vcmp.eq.s32.totalorder %v306_v16, 2  ;;  %s274_s24 = scalar_lea.vmem [#allocation7], %s1091_s5  ;;  %s281_s6 = scalar_lea.vmem [#allocation8], %s1091_s5 }
  0x45   : > { %v630_v24 = vsel %vm333_vm0, 1.0, %v943_v23  ;;  %v631_v25 = vsel %vm334_vm1, 1.0, %v943_v23  ;;  %v632_v28 = vsel %vm335_vm2, 1.0, %v943_v23  ;;  %vm336_vm3 = vcmp.eq.s32.totalorder %v306_v16, 3  ;;  %s418_s26 = sshll.u32 %s274_s24, 4  ;;  %s434_s25 = sshll.u32 %s281_s6, 4  ;;  %s1123_s26 = int_to_ptr.vmem [resolvable:$true] %s418_s26  ;;  %s1130_s25 = int_to_ptr.vmem [resolvable:$true] %s434_s25 }
  0x46   : > { %v309_v6 = vmax.f32 %v307_v4, %v308_v5  ;;  %v633_v31 = vsel %vm336_vm3, 1.0, %v943_v23  ;;  %s641_s10 = sshll.u32 %s929_s18, 7  ;;  %s1121_s7 = scalar_lea.hbm %s1241_s2, %s645_s11 }
  0x47   : > { %s1128_s5 = scalar_lea.hbm %s1242_s3, %s645_s11  ;;  %s1137_s13 = scalar_lea.hbm %s1243_s4, %s641_s10 }
  0x48   : > { %v310_v7 = vsub.f32 %v302_v0, %v309_v6  ;;  %v311_v8 = vsub.f32 %v303_v1, %v309_v6  ;;  %v312_v9 = vsub.f32 %v304_v2, %v309_v6  ;;  %v313_v10 = vsub.f32 %v305_v3, %v309_v6  ;;  %s797_s11 = scalar_lea.vmem %s1123_s26, 512  ;;  %s944_s12 = smov [#allocation7]  }
  0x49   : > { %p798_p8 = scmp.ne.s32.totalorder %s1123_s26, %s797_s11  ;;  %s801_s14 = sshll.u32 %s944_s12, 4  ;;  %s802_s14 = int_to_ptr.vmem [resolvable:$false] %s801_s14 }
  0x4a   : > { %v314_v11 = vmul.f32 1.442695, %v310_v7  ;;  %v316_v12 = vmul.f32 1.442695, %v311_v8  ;;  %v318_v13 = vmul.f32 1.442695, %v312_v9  ;;  %v347_v26 = vmul.f32 %v630_v24, %v310_v7  ;;  %p804_p5 = scmp.lt.s32.totalorder %s1123_s26, %s802_s14 }
  0x4b   : > { %v320_v14 = vmul.f32 1.442695, %v313_v10  ;;  %v348_v27 = vmul.f32 %v631_v25, %v311_v8  ;;  %v349_v29 = vmul.f32 %v632_v28, %v312_v9  ;;  %v350_v32 = vmul.f32 %v633_v31, %v313_v10  ;;  %p799_p0 = pnand %p798_p8, %p1029_p9  ;;  %s803_s29 = scalar_lea.vmem %s802_s14, 1024 }
  0x4c   : > { %729 = vpow2.f32 %v314_v11  ;;  %p805_p6 = scmp.lt.s32.totalorder %s803_s29, %s797_s11 }
  0x4d   : > { %731 = vpow2.f32 %v316_v12  ;;  %v351_v30 = vadd.f32 %v348_v27, %v347_v26  ;;  %p800_p2 = pneg %p799_p0 }
  0x4e   : > { %733 = vpow2.f32 %v318_v13  ;;  %p806_p4 = por %p805_p6, %p804_p5 }
  0x4f   : > { %735 = vpow2.f32 %v320_v14  ;;  %v352_v33 = vadd.f32 %v351_v30, %v349_v29 }
  0x50   : > { %p807_p7 = pnand %p806_p4, %p800_p2 }
  0x51   : > { %v353_v35 = vadd.f32 %v352_v33, %v350_v32 }
  0x59   : > { %v730_v15 = vpop.eup %729 }
  0x5a   : > { %v732_v17 = vpop.eup %731 }
  0x5b   : > { %v734_v18 = vpop.eup %733  ;;  %v322_v19 = vadd.f32 %v732_v17, %v730_v15 }
  0x5c   : > { %v736_v20 = vpop.eup %735 }
  0x5d   : > { %v323_v21 = vadd.f32 %v734_v18, %v322_v19 }
  0x5f   : > { %v324_v22 = vadd.f32 %v736_v20, %v323_v21 }
  0x61   : > { %737 = vrcp.f32 %v324_v22 }
  0x62   : > { %739 = vlog2.f32 %v324_v22 }
  0x6e   : > { %v738_v34 = vpop.eup %737 }
  0x6f   : > { %v740_v36 = vpop.eup %739  ;;  %v326_v37 = vmul.f32 %v738_v34, %v324_v22 }
  0x70   : > { %v346_v38 = vmul.f32 0.6931472, %v740_v36 }
  0x71   : > { %v327_v39 = vsub.f32 2.0, %v326_v37 }
  0x72   : > { %v354_v40 = vsub.f32 %v346_v38, %v353_v35 }
  0x73   : > { %v328_v41 = vmul.f32 %v738_v34, %v327_v39 }
  0x74   : > { %393 = vst [vmem:[%s1110_s8] sm:$0xff] %v354_v40  ;;  %s395_s8 = scalar_lea.sflag [#allocation4], %s1088_s22 }
  0x75   : > { %v329_v42 = vmul.f32 %v730_v15, %v328_v41  ;;  %v330_v43 = vmul.f32 %v732_v17, %v328_v41  ;;  %v331_v44 = vmul.f32 %v734_v18, %v328_v41  ;;  %v332_v45 = vmul.f32 %v736_v20, %v328_v41 }
  0x77   : > { %v375_v46 = vmul.f32 %v329_v42, %v329_v42  ;;  %v376_v47 = vmul.f32 %v330_v43, %v330_v43  ;;  %v377_v48 = vmul.f32 %v331_v44, %v331_v44  ;;  %v378_v49 = vmul.f32 %v332_v45, %v332_v45 }
  0x78   : > { %v359_v50 = vmul.f32 %v630_v24, %v329_v42  ;;  %v360_v51 = vmul.f32 %v631_v25, %v330_v43  ;;  %v361_v52 = vmul.f32 %v632_v28, %v331_v44  ;;  %v362_v53 = vmul.f32 %v633_v31, %v332_v45 }
  0x79   : > { %v379_v54 = vadd.f32 %v630_v24, %v375_v46  ;;  %v380_v55 = vadd.f32 %v631_v25, %v376_v47  ;;  %v381_v56 = vadd.f32 %v632_v28, %v377_v48  ;;  %v382_v57 = vadd.f32 %v633_v31, %v378_v49 }
  0x7a   : > { %367 = vst [vmem:[%s274_s24] sm:$0xff] %v359_v50  ;;  %368 = vst [vmem:[%s274_s24 + $0x8] sm:$0xff] %v360_v51 }
  0x7b   : > { %369 = vst [vmem:[%s274_s24 + $0x10] sm:$0xff] %v361_v52  ;;  %370 = vst [vmem:[%s274_s24 + $0x18] sm:$0xff] %v362_v53 }
  0x7c   : > { %387 = vst [vmem:[%s281_s6] sm:$0xff] %v379_v54  ;;  %388 = vst [vmem:[%s281_s6 + $0x8] sm:$0xff] %v380_v55 }
  0x7d   : > { %389 = vst [vmem:[%s281_s6 + $0x10] sm:$0xff] %v381_v56  ;;  %390 = vst [vmem:[%s281_s6 + $0x18] sm:$0xff] %v382_v57 }
  0x7e   : > { %810 = shalt.err (!%p807_p7)
}
  0x7f   : > { %s811_s24 = scalar_lea.hbm %s1121_s7, 512  ;;  %s815_s0 = scalar_lea.hbm %s1241_s2, 1024 }
  0x80   : > { %p812_p1 = scmp.ne.s32.totalorder %s1121_s7, %s811_s24  ;;  %p816_p3 = scmp.lt.s32.totalorder %s1121_s7, %s1241_s2 }
  0x81   : > { %p817_p8 = scmp.lt.s32.totalorder %s815_s0, %s811_s24 }
  0x82   : > { %p813_p10 = pnand %p812_p1, %p1029_p9 }
  0x83   : > { %p818_p0 = por %p817_p8, %p816_p3 }
  0x84   : > { %p814_p13 = pneg %p813_p10 }
  0x86   : > { %p819_p2 = pnand %p818_p0, %p814_p13 }
  0x88   : > { %822 = shalt.err (!%p819_p2)
}
  0x89   : > { %s945_s11 = smov 128   ;;  %s946_s12 = smov 8  }
  0x8a   : > { %651 = dma.vmem_to_hbm [thread:$0]  (%p1029_p9), %s1123_s26, 512, %s1121_s7, %s395_s8, %s945_s11, %s945_s11, %s946_s12  }
  0x8b   : > { %s1167_s14 = scalar_lea.sflag [#allocation9], %s399_s27  ;;  %s823_s29 = scalar_lea.vmem %s1130_s25, 512 }
  0x8c   : > { %p824_p5 = scmp.ne.s32.totalorder %s1130_s25, %s823_s29  ;;  %s947_s24 = smov [#allocation8]  }
  0x8d   : > { %s827_s6 = sshll.u32 %s947_s24, 4  ;;  %s828_s6 = int_to_ptr.vmem [resolvable:$false] %s827_s6 }
  0x8e   : > { %p825_p6 = pnand %p824_p5, %p1029_p9  ;;  %s829_s10 = scalar_lea.vmem %s828_s6, 1024 }
  0x8f   : > { %p830_p7 = scmp.lt.s32.totalorder %s1130_s25, %s828_s6  ;;  %p831_p1 = scmp.lt.s32.totalorder %s829_s10, %s823_s29 }
  0x90   : > { %p826_p4 = pneg %p825_p6 }
  0x91   : > { %p832_p10 = por %p831_p1, %p830_p7 }
  0x93   : > { %p833_p13 = pnand %p832_p10, %p826_p4 }
  0x95   : > { %836 = shalt.err (!%p833_p13)
}
  0x96   : > { %s837_s21 = scalar_lea.hbm %s1128_s5, 512  ;;  %s841_s26 = scalar_lea.hbm %s1242_s3, 1024 }
  0x97   : > { %p838_p3 = scmp.ne.s32.totalorder %s1128_s5, %s837_s21  ;;  %p842_p2 = scmp.lt.s32.totalorder %s1128_s5, %s1242_s3 }
  0x98   : > { %p843_p5 = scmp.lt.s32.totalorder %s841_s26, %s837_s21 }
  0x99   : > { %p839_p8 = pnand %p838_p3, %p1029_p9 }
  0x9a   : > { %p844_p6 = por %p843_p5, %p842_p2 }
  0x9b   : > { %p840_p0 = pneg %p839_p8 }
  0x9d   : > { %p845_p4 = pnand %p844_p6, %p840_p0 }
  0x9f   : > { %848 = shalt.err (!%p845_p4)
}
  0xa0   : > { %652 = dma.vmem_to_hbm [thread:$0]  (%p1029_p9), %s1130_s25, 512, %s1128_s5, %s1167_s14, %s945_s11, %s945_s11, %s946_s12  }
  0xa1   : > { %s849_s0 = scalar_lea.vmem %s1132_s9, 128  ;;  %s948_s18 = smov [#allocation10]  }
  0xa2   : > { %p850_p7 = scmp.ne.s32.totalorder %s1132_s9, %s849_s0  ;;  %s853_s23 = sshll.u32 %s948_s18, 4  ;;  %s854_s23 = int_to_ptr.vmem [resolvable:$false] %s853_s23 }
  0xa3   : > { %s855_s29 = scalar_lea.vmem %s854_s23, 256  ;;  %p856_p13 = scmp.lt.s32.totalorder %s1132_s9, %s854_s23 }
  0xa4   : > { %p851_p1 = pnand %p850_p7, %p1029_p9  ;;  %p857_p3 = scmp.lt.s32.totalorder %s855_s29, %s849_s0 }
  0xa6   : > { %p852_p10 = pneg %p851_p1  ;;  %p858_p8 = por %p857_p3, %p856_p13 }
  0xa8   : > { %p859_p0 = pnand %p858_p8, %p852_p10 }
  0xaa   : > { %862 = shalt.err (!%p859_p0)
}
  0xab   : > { %s863_s24 = scalar_lea.hbm %s1137_s13, 128  ;;  %s867_s11 = scalar_lea.hbm %s1243_s4, 256 }
  0xac   : > { %p864_p2 = scmp.ne.s32.totalorder %s1137_s13, %s863_s24  ;;  %p868_p4 = scmp.lt.s32.totalorder %s1137_s13, %s1243_s4 }
  0xad   : > { %p869_p7 = scmp.lt.s32.totalorder %s867_s11, %s863_s24 }
  0xae   : > { %p865_p5 = pnand %p864_p2, %p1029_p9 }
  0xaf   : > { %p870_p1 = por %p869_p7, %p868_p4 }
  0xb0   : > { %p866_p6 = pneg %p865_p5 }
  0xb2   : > { %p871_p10 = pnand %p870_p1, %p866_p6 }
  0xb4   : > { %874 = shalt.err (!%p871_p10)
}
  0xb5   : > { %653 = dma.vmem_to_hbm [thread:$0]  (%p1029_p9), %s1132_s9, 128, %s1137_s13, %s1167_s14  }
  0xb6 PF: > { %s462_s10 = sand.u32 1, %s917_s15   ;;  %p665_p13 = pnand %p618_p12, %p1038_p11 }
  0xb7   : > { %s463_s21 = scalar_lea.sflag [#allocation4], %s462_s10 }
  0xb8   : > { %p666_p3 = pneg %p665_p13 }
  0xba   : > { %908 = dma.done.wait (%p666_p3), %s463_s21, 512  }
  0xbb   : > { %910 = vsyncadd (%p666_p3), %s463_s21, 4294966784  ;;  %s1256_s22 = sadd.s32 4294967294, %s937_s20  }
  0xbc   : > { %s471_s27 = sand.u32 1, %s1256_s22  }
  0xbd   : > { %s472_s28 = scalar_lea.sflag [#allocation9], %s471_s27 }
  0xbe   : > { %912 = dma.done.wait (%p666_p3), %s472_s28, 640  }
  0xbf   : > { %914 = vsyncadd (%p666_p3), %s472_s28, 4294966656  ;;  %s27_s20 = sadd.s32 1, %s937_s20   ;;  %s1257_s9 = sld [smem:[#allocation16_spill]] }
  0xc0   : > { %p24_p9 = scmp.ge.s32.totalorder %s27_s20, 4   ;;  %s1258_s30 = sld [smem:[#allocation15_spill]] }
  0xc1   : > { %s1259_s15 = smov %s921_s16  ;;  %s1260_s16 = smov %s925_s17 }
  0xc2   : > { %s1262_s18 = smov %s933_s19  ;;  %26 = sbr.rel (!%p24_p9) target bundleno = 12 (0xc), region = 122 }
  0xc5   : > { %s1261_s17 = smov %s1257_s9 }
  0xc6   : > { %s1263_s19 = smov %s1258_s30 }
  0xc7   :  { %486 = vsyncpa [#allocation3], 1 }
  0xc8   :  { %488 = vsyncpa [#allocation3 + $0x1], 1 }
  0xc9   :  { %489 = vsyncpa [#allocation6], 1 }
  0xca   :  { %491 = vsyncpa [#allocation6 + $0x1], 1 }
  0xcb   :  { %492 = vsyncpa [#allocation4], 1 }
  0xcc   :  { %494 = vsyncpa [#allocation4 + $0x1], 1 }
  0xcd   :  { %495 = vsyncpa [#allocation9], 1 }
  0xce   :  { %497 = vsyncpa [#allocation9 + $0x1], 1 }

</bundles_post_ra>
